<compile_context>
chip_gen: v6e
topology: v6e:2x2x1
jax: 0.10.0
libtpu: 0.0.40
codegen_flags: <defaults>
</compile_context>

<pallas_src>
import math

import jax
import jax.numpy as jnp
from jax.experimental import pallas as pl
from jax.experimental.pallas import tpu as pltpu

H = W = 16
S = H * W  # 256

_TARGET_BLOCK_BYTES = 4 * 1024 * 1024   # 2-4 MiB: measured HBM-roofline plateau
_MIN_GRID_STEPS = 4                      # keep DMA pipelining + v7x 2-TC split alive


def _divisors(n):
    ds = []
    i = 1
    while i * i <= n:
        if n % i == 0:
            ds.append(i)
            if i != n // i:
                ds.append(n // i)
        i += 1
    return sorted(ds)


def _vmem_budget_bytes():
    # Generation-aware: ~75% of physical VMEM (64 MiB on v7x, 128 MiB on v5e/v6e).
    try:
        cap = pltpu.get_tpu_info().vmem_capacity_bytes
    except Exception:
        cap = 64 * 1024 * 1024
    return int(cap) * 3 // 4


def _choose_tiles(B, C, itemsize, vmem_budget):
    """Pick (tb, tc): tc a multiple of 128 dividing C (else full C), tb dividing B.

    Prefer blocks near _TARGET_BLOCK_BYTES, >= _MIN_GRID_STEPS (even) grid steps,
    and >= 4 KiB contiguous per-row input reads; shrink tb before tc. Returns
    None if even the smallest legal block overflows the VMEM budget."""
    if C % 128 == 0:
        tc_cands = [128 * d for d in _divisors(C // 128)]
    else:
        tc_cands = [C]   # full-dim block is always layout-legal
    tb_cands = _divisors(B)

    best, best_score = None, -float("inf")
    for tc in tc_cands:
        for tb in tb_cands:
            block = tb * S * tc * itemsize
            if 4 * block > vmem_budget:        # double-buffered in + out blocks
                continue
            steps = (B // tb) * (C // tc)
            score = -abs(math.log2(block / _TARGET_BLOCK_BYTES))
            if steps < _MIN_GRID_STEPS:
                score -= 4.0 * (_MIN_GRID_STEPS - steps)
            if steps > 1 and steps % 2 == 1:
                score -= 0.5                   # v7x megacore prefers an even split
            if tc < C and tc * itemsize < 4096:
                score -= 2.0                   # keep strided HBM reads >= 4 KiB chunks
            score += 0.01 * math.log2(tc)      # at equal cost, shrink tb before tc
            if score > best_score:
                best_score, best = score, (tb, tc)
    return best


def _transpose_kernel(x_ref, o_ref):
    # x_ref: (tb, S, tc) VMEM block; o_ref: (tb, tc, S) VMEM block.
    # One batched re-layout of the whole block: Mosaic tiles the XLU transpose
    # itself and interleaves pops with stores per (8,128) tile — no unrolled
    # per-batch loop, no unbounded live ranges / spills.
    o_ref[...] = jnp.swapaxes(x_ref[...], 1, 2)


def tokenizer02_forward(x, *, force_pallas=False):
    """x: (B, 256, C) -> (B, C, 16, 16), matching rearrange('b (h w) c -> b c 16 16')."""
    B, S_in, C = x.shape
    assert S_in == S, f"sequence length must be {S} (=16*16), got {S_in}"
    itemsize = jnp.dtype(x.dtype).itemsize
    total_bytes = B * S * C * itemsize

    # Small-problem fast path: lane utilization < 128 or workload smaller than a
    # couple of grid steps' worth of DMA -> XLA's native transpose wins.
    if (C < 128 or total_bytes < 2 * 1024 * 1024) and not force_pallas:
        return jnp.transpose(x, (0, 2, 1)).reshape(B, C, H, W)

    vmem_budget = _vmem_budget_bytes()
    tiles = _choose_tiles(B, C, itemsize, vmem_budget)
    if tiles is None:
        # C not tileable (not a multiple of 128) and one block blows VMEM: bail out.
        return jnp.transpose(x, (0, 2, 1)).reshape(B, C, H, W)
    tb, tc = tiles

    vmem_need = 4 * tb * S * tc * itemsize            # double-buffered in + out
    vmem_limit = int(min(vmem_budget, max(vmem_need * 5 // 4, 8 * 1024 * 1024)))

    out_cs = pl.pallas_call(
        _transpose_kernel,
        out_shape=jax.ShapeDtypeStruct((B, C, S), x.dtype),
        grid_spec=pltpu.PrefetchScalarGridSpec(
            num_scalar_prefetch=0,
            grid=(B // tb, C // tc),
            in_specs=[pl.BlockSpec((tb, S, tc), lambda bi, ci: (bi, 0, ci))],
            out_specs=pl.BlockSpec((tb, tc, S), lambda bi, ci: (bi, ci, 0)),
        ),
        compiler_params=pltpu.CompilerParams(
            dimension_semantics=("parallel", "parallel"),
            vmem_limit_bytes=vmem_limit,
        ),
        cost_estimate=pl.CostEstimate(
            flops=0, transcendentals=0, bytes_accessed=2 * total_bytes),
    )(x)

    # Metadata-only reshape outside the kernel: keeps the in-kernel output lane
    # dim at 256 (unmasked vst); (B, C, 256) -> (B, C, 16, 16) is free glue.
    return out_cs.reshape(B, C, H, W)


if __name__ == "__main__":
    k1, k2 = jax.random.split(jax.random.PRNGKey(0))

    # Case 1: tiny-C fast path (Pallas intentionally bypassed).
    B1, C1 = 2, 8
    x1 = jax.random.normal(k1, (B1, S, C1), dtype=jnp.float32)
    out1 = tokenizer02_forward(x1)
    ref1 = jnp.transpose(x1, (0, 2, 1)).reshape(B1, C1, H, W)

    # Case 2: lane-dense C to exercise the Pallas path (>= 4 grid steps, batched swapaxes).
    B2, C2 = 2, 256
    x2 = jax.random.normal(k2, (B2, S, C2), dtype=jnp.float32)
    out2 = tokenizer02_forward(x2, force_pallas=True)
    ref2 = jnp.transpose(x2, (0, 2, 1)).reshape(B2, C2, H, W)

    jax.block_until_ready((out1, out2))

    assert out1.shape == (B1, C1, H, W), out1.shape
    assert out2.shape == (B2, C2, H, W), out2.shape
    assert jnp.allclose(out1, ref1), "mismatch vs reference rearrange (fast path)"
    assert jnp.allclose(out2, ref2), "mismatch vs reference rearrange (pallas path)"

    print("KERNEL_OK")
</pallas_src>

<mosaic_0001>
module attributes {stable_mosaic.version = 11 : i64} {
  func.func @_transpose_kernel(%arg0: i32, %arg1: i32, %arg2: memref<1x256x128xf32, #tpu.memory_space<vmem>>, %arg3: memref<1x128x256xf32, #tpu.memory_space<vmem>>) attributes {dimension_semantics = [#tpu.dimension_semantics<parallel>, #tpu.dimension_semantics<parallel>], iteration_bounds = array<i64: 2, 2>, scalar_prefetch = 0 : i64, scratch_operands = 0 : i64, tpu.core_type = #tpu.core_type<tc>, window_params = [{transform_indices = @transform_0, window_bounds = array<i64: 1, 256, 128>}, {transform_indices = @transform_1, window_bounds = array<i64: 1, 128, 256>}]} {
    %c0 = arith.constant 0 : index
    %c0_0 = arith.constant 0 : index
    %c0_1 = arith.constant 0 : index
    %0 = vector.load %arg2[%c0, %c0_0, %c0_1] : memref<1x256x128xf32, #tpu.memory_space<vmem>>, vector<1x256x128xf32>
    %1 = tpu.transpose %0, [0, 2, 1] : vector<1x256x128xf32> -> vector<1x128x256xf32>
    %c0_2 = arith.constant 0 : index
    %c0_3 = arith.constant 0 : index
    %c0_4 = arith.constant 0 : index
    %2 = vector.load %arg3[%c0_2, %c0_3, %c0_4] : memref<1x128x256xf32, #tpu.memory_space<vmem>>, vector<1x128x256xf32>
    tpu.vector_store %arg3[%c0_2, %c0_3, %c0_4], %1 {strides = array<i32>} : memref<1x128x256xf32, #tpu.memory_space<vmem>>, vector<1x128x256xf32>,
    return
  }
  func.func @transform_0(%arg0: i32, %arg1: i32) -> (i32, i32, i32) {
    %c0_i32 = arith.constant 0 : i32
    %c0_i32_0 = arith.constant 0 : i32
    return %arg0, %c0_i32, %arg1 : i32, i32, i32
  }
  func.func @transform_1(%arg0: i32, %arg1: i32) -> (i32, i32, i32) {
    %c0_i32 = arith.constant 0 : i32
    %c0_i32_0 = arith.constant 0 : i32
    return %arg0, %arg1, %c0_i32 : i32, i32, i32
  }
}

</mosaic_0001>

<bundles_post_ra>
// kernel: tpu_custom_call.1
= control target key start
LH: loop header
LB: loop body
LE: loop exit
PB: predicated region body
PF: predicated region fallthrough
CT: control target
= control target key end

     0   :  { %6 = vsyncpa [#allocation3], 0  ;;  %s870_s0 = inlined_call_operand.hbm [shape: f32[2,256,256], index: 0, kind: input, shape index: {}]   ;;  %s871_s1 = inlined_call_operand.hbm [shape: f32[2,256,256], index: 1, kind: output, shape index: {}]  }
   0x1   :  { %8 = vsyncpa [#allocation3 + $0x1], 0 }
   0x2   :  { %9 = vsyncpa [#allocation4], 0 }
   0x3   :  { %11 = vsyncpa [#allocation4 + $0x1], 0  ;;  %s631_s6 = smov 0   ;;  %s633_s7 = smov 0  }
   0x4   :  { %s635_s8 = smov 0   ;;  %s637_s9 = smov 0  }
   0x5   :  { %s639_s10 = smov 0   ;;  %s641_s11 = smov 0  }
   0x6   :  { %s643_s12 = smov 0   ;;  %s645_s13 = smov 0  }
   0x7 LB: > { %s387_s14 = sadd.s32 4294967295, %s612_s13   ;;  %s388_s15 = sadd.s32 4294967294, %s612_s13   ;;  %s612_s13 = sphi %s645_s13, %s17_s13   ;;  %s608_s12 = sphi %s643_s12, %s883_s12   ;;  %s604_s11 = sphi %s641_s11, %s882_s11   ;;  %s600_s10 = sphi %s639_s10, %s881_s10   ;;  %s596_s9 = sphi %s637_s9, %s880_s9   ;;  %s592_s8 = sphi %s635_s8, %s879_s8   ;;  %s588_s7 = sphi %s633_s7, %s878_s7   ;;  %s584_s6 = sphi %s631_s6, %s877_s6  }
   0x8   : > { %s26_s16 = sadd.s32 1, %s604_s11  ;;  %s29_s17 = sadd.s32 1, %s608_s12 }
   0x9   : > { %p27_p0 = scmp.ge.s32.totalorder %s26_s16, 2  ;;  %s38_s18 = sadd.s32 1, %s592_s8 }
   0xa   : > { %p45_p1 = scmp.ne.s32.totalorder %s592_s8, %s588_s7  ;;  %p46_p2 = scmp.eq.s32.totalorder %s612_s13, 0 }
   0xb   : > { %s885_s16 = smov (%p27_p0, %s26_s16), 0  ;;  %s887_s17 = smov (!%p27_p0, %s29_s17), %s608_s12 }
   0xc   : > { %s34_s19 = ssub.s32 %s604_s11, %s885_s16  ;;  %p684_p3 = por %p46_p2, %p45_p1 }
   0xd   : > { %p31_p4 = scmp.ge.s32.totalorder %s887_s17, 2  ;;  %p51_p5 = scmp.ne.s32.totalorder %s588_s7, %s584_s6 }
   0xe   : > { %p52_p6 = scmp.eq.s32.totalorder %s387_s14, 0  ;;  %p77_p7 = scmp.eq.s32.totalorder %s387_s14, 3 }
   0xf   : > { %s889_s17 = smov (%p31_p4, %s887_s17), 0  ;;  %p83_p10 = scmp.eq.s32.totalorder %s388_s15, 3 }
  0x10   : > { %p692_p8 = por %p52_p6, %p51_p5  ;;  %p696_p9 = por %p77_p7, %p45_p1 }
  0x11   : > { %s33_s23 = ssub.s32 %s608_s12, %s889_s17  ;;  %p702_p12 = por %p83_p10, %p51_p5 }
  0x12   : > { %s35_s24 = sor.u32 %s34_s19, %s33_s23  ;;  %p417_p13 = scmp.lt.s32.totalorder %s612_s13, 4 }
  0x13   : > { %p36_p11 = scmp.eq.s32.totalorder %s35_s24, 0  ;;  %s103_s26 = sand.u32 1, %s592_s8  }
  0x14   : > { %s391_s28 = sshll.u32 %s103_s26, 8  ;;  %s392_s29 = sshll.u32 %s608_s12, 6 }
  0x15   : > { %s709_s27 = scalar_select %p36_p11, %s592_s8, %s38_s18  }
  0x16   : > { %s112_s30 = sadd.s32 %s604_s11, %s392_s29  ;;  %s107_s2 = scalar_lea.vmem [#allocation2], %s391_s28 }
  0x17   : > { %s115_s3 = sshll.u32 %s107_s2, 4  ;;  %s393_s4 = sshll.u32 %s112_s30, 7  ;;  %s116_s3 = int_to_ptr.vmem [resolvable:$true] %s115_s3 }
  0x18   : > { %s114_s15 = scalar_lea.hbm %s870_s0, %s393_s4  ;;  %p718_p0 = pnand %p417_p13, %p684_p3 }
  0x19   : > { %s104_s23 = scalar_lea.sflag [#allocation3], %s103_s26  ;;  %s501_s18 = scalar_lea.vmem %s116_s3, 4096 }
  0x1a   : > { %p490_p1 = pneg %p718_p0  ;;  %p502_p2 = scmp.ne.s32.totalorder %s116_s3, %s501_s18 }
  0x1b   : > { %s614_s24 = smov [#allocation2]  }
  0x1c   : > { %p504_p4 = pnand %p502_p2, %p490_p1  ;;  %s506_s28 = sshll.u32 %s614_s24, 4  ;;  %s507_s28 = int_to_ptr.vmem [resolvable:$false] %s506_s28 }
  0x1d   : > { %s508_s29 = scalar_lea.vmem %s507_s28, 8192  ;;  %p509_p6 = scmp.lt.s32.totalorder %s116_s3, %s507_s28 }
  0x1e   : > { %p505_p5 = pneg %p504_p4  ;;  %p510_p7 = scmp.lt.s32.totalorder %s508_s29, %s501_s18 }
  0x20   : > { %p511_p10 = por %p510_p7, %p509_p6 }
  0x22   : > { %p512_p11 = pnand %p511_p10, %p505_p5 }
  0x24   : > { %515 = shalt.err (!%p512_p11)
}
  0x25   : > { %s615_s20 = smov 256   ;;  %s616_s26 = smov 128  }
  0x26   : > { %s617_s30 = smov 8   ;;  %p394_p3 = scmp.ge.s32.totalorder %s612_s13, 1 }
  0x27   : > { %412 = dma.hbm_to_vmem [thread:$0]  (!%p718_p0), %s114_s15, 4096, %s116_s3, %s104_s23, %s615_s20, %s616_s26, %s617_s30  }
  0x28   : > { %p123_p13 = scmp.lt.s32.totalorder %s612_s13, 5 }
  0x2a   : > { %p124_p1 = pnand %p394_p3, %p123_p13 }
  0x2b   : > { %s729_s2 = sand.u32 (!%p124_p1), 1, %s588_s7  }
  0x2c   : > { %127 = sbr.rel (%p124_p1) target bundleno = 251 (0xfb), region = 24  ;;  %s395_s4 = sshll.u32 (!%p124_p1), %s729_s2, 8 }
  0x2d   : > { %s130_s5 = scalar_lea.sflag (!%p124_p1), [#allocation3], %s729_s2  ;;  %s735_s14 = scalar_lea.vmem (!%p124_p1), [#allocation2], %s395_s4 }
  0x31   : > { %575 = dma.done.wait (%p692_p8), %s130_s5, 4096  }
  0x32   : > { %577 = vsyncadd (%p692_p8), %s130_s5, 4294963200  ;;  %v169_v0 = vld [vmem:[%s735_s14 + $0x80] sm:$0xff]  ;;  %v170_v2 = vld [vmem:[%s735_s14 + $0x88] sm:$0xff]  ;;  %s775_s21 = scalar_lea.vmem [#allocation5], %s395_s4  ;;  %s404_s3 = sshll.u32 %s596_s9, 5 }
  0x33   : > { %v153_v1 = vld [vmem:[%s735_s14] sm:$0xff]  ;;  %217 = vxpose.xlu1.b32.start [1/16] %v169_v0, 128  ;;  %v154_v3 = vld [vmem:[%s735_s14 + $0x8] sm:$0xff]  ;;  %v171_v4 = vld [vmem:[%s735_s14 + $0x90] sm:$0xff]  ;;  %s400_s15 = sshll.u32 %s600_s10, 6  ;;  %s298_s18 = sshll.u32 %s775_s21, 4  ;;  %s815_s18 = int_to_ptr.vmem [resolvable:$true] %s298_s18 }
  0x34   : > { %185 = vxpose.xlu0.b32.start [1/16] %v153_v1, 128  ;;  %v155_v5 = vld [vmem:[%s735_s14 + $0x10] sm:$0xff]  ;;  %v172_v6 = vld [vmem:[%s735_s14 + $0x98] sm:$0xff]  ;;  %v173_v8 = vld [vmem:[%s735_s14 + $0xa0] sm:$0xff]  ;;  %s295_s19 = sadd.s32 %s404_s3, %s400_s15  ;;  %s282_s10 = scalar_lea.sflag [#allocation4], %s729_s2 }
  0x35   : > { %v156_v7 = vld [vmem:[%s735_s14 + $0x18] sm:$0xff]  ;;  %v157_v9 = vld [vmem:[%s735_s14 + $0x20] sm:$0xff]  ;;  %v174_v10 = vld [vmem:[%s735_s14 + $0xa8] sm:$0xff]  ;;  %s401_s23 = sshll.u32 %s295_s19, 7  ;;  %s516_s29 = scalar_lea.vmem %s815_s18, 4096 }
  0x36   : > { %v158_v11 = vld [vmem:[%s735_s14 + $0x28] sm:$0xff]  ;;  %v175_v12 = vld [vmem:[%s735_s14 + $0xb0] sm:$0xff]  ;;  %v176_v14 = vld [vmem:[%s735_s14 + $0xb8] sm:$0xff]  ;;  %s813_s9 = scalar_lea.hbm %s871_s1, %s401_s23  ;;  %p517_p8 = scmp.ne.s32.totalorder %s815_s18, %s516_s29 }
  0x37   : > { %218 = vxpose.xlu1.b32.cont [2/16] %v170_v2, 128  ;;  %v159_v13 = vld [vmem:[%s735_s14 + $0x30] sm:$0xff]  ;;  %v160_v15 = vld [vmem:[%s735_s14 + $0x38] sm:$0xff]  ;;  %v177_v16 = vld [vmem:[%s735_s14 + $0xc0] sm:$0xff]  ;;  %s618_s20 = smov [#allocation5]  }
  0x38   : > { %186 = vxpose.xlu0.b32.cont [2/16] %v154_v3, 128  ;;  %v161_v17 = vld [vmem:[%s735_s14 + $0x40] sm:$0xff]  ;;  %v178_v18 = vld [vmem:[%s735_s14 + $0xc8] sm:$0xff]  ;;  %v179_v20 = vld [vmem:[%s735_s14 + $0xd0] sm:$0xff]  ;;  %p518_p0 = pnand %p517_p8, %p696_p9  ;;  %s520_s26 = sshll.u32 %s618_s20, 4  ;;  %s521_s26 = int_to_ptr.vmem [resolvable:$false] %s520_s26 }
  0x39   : > { %v162_v19 = vld [vmem:[%s735_s14 + $0x48] sm:$0xff]  ;;  %v163_v21 = vld [vmem:[%s735_s14 + $0x50] sm:$0xff]  ;;  %v180_v22 = vld [vmem:[%s735_s14 + $0xd8] sm:$0xff]  ;;  %s522_s30 = scalar_lea.vmem %s521_s26, 8192  ;;  %p523_p4 = scmp.lt.s32.totalorder %s815_s18, %s521_s26 }
  0x3a   : > { %v164_v23 = vld [vmem:[%s735_s14 + $0x58] sm:$0xff]  ;;  %v181_v24 = vld [vmem:[%s735_s14 + $0xe0] sm:$0xff]  ;;  %v182_v26 = vld [vmem:[%s735_s14 + $0xe8] sm:$0xff]  ;;  %p519_p2 = pneg %p518_p0  ;;  %p524_p5 = scmp.lt.s32.totalorder %s522_s30, %s516_s29 }
  0x3b   : > { %219 = vxpose.xlu1.b32.cont [3/16] %v171_v4, 128  ;;  %v165_v25 = vld [vmem:[%s735_s14 + $0x60] sm:$0xff]  ;;  %v166_v27 = vld [vmem:[%s735_s14 + $0x68] sm:$0xff]  ;;  %v183_v28 = vld [vmem:[%s735_s14 + $0xf0] sm:$0xff] }
  0x3c   : > { %187 = vxpose.xlu0.b32.cont [3/16] %v155_v5, 128  ;;  %v167_v29 = vld [vmem:[%s735_s14 + $0x70] sm:$0xff]  ;;  %v184_v30 = vld [vmem:[%s735_s14 + $0xf8] sm:$0xff]  ;;  %p525_p6 = por %p524_p5, %p523_p4 }
  0x3d   : > { %v168_v31 = vld [vmem:[%s735_s14 + $0x78] sm:$0xff] }
  0x3e   : > { %p526_p7 = pnand %p525_p6, %p519_p2 }
  0x3f   : > { %220 = vxpose.xlu1.b32.cont [4/16] %v172_v6, 128 }
  0x40   : > { %188 = vxpose.xlu0.b32.cont [4/16] %v156_v7, 128 }
  0x43   : > { %221 = vxpose.xlu1.b32.cont [5/16] %v173_v8, 128 }
  0x44   : > { %189 = vxpose.xlu0.b32.cont [5/16] %v157_v9, 128 }
  0x47   : > { %222 = vxpose.xlu1.b32.cont [6/16] %v174_v10, 128 }
  0x48   : > { %190 = vxpose.xlu0.b32.cont [6/16] %v158_v11, 128 }
  0x4b   : > { %223 = vxpose.xlu1.b32.cont [7/16] %v175_v12, 128 }
  0x4c   : > { %191 = vxpose.xlu0.b32.cont [7/16] %v159_v13, 128 }
  0x4f   : > { %224 = vxpose.xlu1.b32.cont [8/16] %v176_v14, 128 }
  0x50   : > { %192 = vxpose.xlu0.b32.cont [8/16] %v160_v15, 128 }
  0x53   : > { %225 = vxpose.xlu1.b32.cont [9/16] %v177_v16, 128 }
  0x54   : > { %193 = vxpose.xlu0.b32.cont [9/16] %v161_v17, 128 }
  0x57   : > { %226 = vxpose.xlu1.b32.cont [10/16] %v178_v18, 128 }
  0x58   : > { %194 = vxpose.xlu0.b32.cont [10/16] %v162_v19, 128 }
  0x5b   : > { %227 = vxpose.xlu1.b32.cont [11/16] %v179_v20, 128 }
  0x5c   : > { %195 = vxpose.xlu0.b32.cont [11/16] %v163_v21, 128 }
  0x5f   : > { %228 = vxpose.xlu1.b32.cont [12/16] %v180_v22, 128 }
  0x60   : > { %196 = vxpose.xlu0.b32.cont [12/16] %v164_v23, 128 }
  0x63   : > { %229 = vxpose.xlu1.b32.cont [13/16] %v181_v24, 128 }
  0x64   : > { %197 = vxpose.xlu0.b32.cont [13/16] %v165_v25, 128 }
  0x67   : > { %230 = vxpose.xlu1.b32.cont [14/16] %v182_v26, 128 }
  0x68   : > { %198 = vxpose.xlu0.b32.cont [14/16] %v166_v27, 128 }
  0x6b   : > { %231 = vxpose.xlu1.b32.cont [15/16] %v183_v28, 128 }
  0x6c   : > { %199 = vxpose.xlu0.b32.cont [15/16] %v167_v29, 128 }
  0x6f   : > { %232 = vxpose.xlu1.b32.end [16/16] %v184_v30, 128 }
  0x70   : > { %200 = vxpose.xlu0.b32.end [16/16] %v168_v31, 128 }
  0xaf   : > { %v233_v32 = vpop.trf.xlu1 }
  0xb0   : > { %v201_v33 = vpop.trf.xlu0  ;;  %250 = vst [vmem:[%s775_s21 + $0x8] sm:$0xff] %v233_v32 }
  0xb1   : > { %249 = vst [vmem:[%s775_s21] sm:$0xff] %v201_v33 }
  0xb3   : > { %v234_v34 = vpop.trf.xlu1 }
  0xb4   : > { %v202_v35 = vpop.trf.xlu0  ;;  %252 = vst [vmem:[%s775_s21 + $0x18] sm:$0xff] %v234_v34 }
  0xb5   : > { %251 = vst [vmem:[%s775_s21 + $0x10] sm:$0xff] %v202_v35 }
  0xb7   : > { %v235_v36 = vpop.trf.xlu1 }
  0xb8   : > { %v203_v37 = vpop.trf.xlu0  ;;  %254 = vst [vmem:[%s775_s21 + $0x28] sm:$0xff] %v235_v36 }
  0xb9   : > { %253 = vst [vmem:[%s775_s21 + $0x20] sm:$0xff] %v203_v37 }
  0xbb   : > { %v236_v38 = vpop.trf.xlu1 }
  0xbc   : > { %v204_v39 = vpop.trf.xlu0  ;;  %256 = vst [vmem:[%s775_s21 + $0x38] sm:$0xff] %v236_v38 }
  0xbd   : > { %255 = vst [vmem:[%s775_s21 + $0x30] sm:$0xff] %v204_v39 }
  0xbf   : > { %v237_v40 = vpop.trf.xlu1 }
  0xc0   : > { %v205_v41 = vpop.trf.xlu0  ;;  %258 = vst [vmem:[%s775_s21 + $0x48] sm:$0xff] %v237_v40 }
  0xc1   : > { %257 = vst [vmem:[%s775_s21 + $0x40] sm:$0xff] %v205_v41 }
  0xc3   : > { %v238_v42 = vpop.trf.xlu1 }
  0xc4   : > { %v206_v43 = vpop.trf.xlu0  ;;  %260 = vst [vmem:[%s775_s21 + $0x58] sm:$0xff] %v238_v42 }
  0xc5   : > { %259 = vst [vmem:[%s775_s21 + $0x50] sm:$0xff] %v206_v43 }
  0xc7   : > { %v239_v44 = vpop.trf.xlu1 }
  0xc8   : > { %v207_v45 = vpop.trf.xlu0  ;;  %262 = vst [vmem:[%s775_s21 + $0x68] sm:$0xff] %v239_v44 }
  0xc9   : > { %261 = vst [vmem:[%s775_s21 + $0x60] sm:$0xff] %v207_v45 }
  0xcb   : > { %v240_v46 = vpop.trf.xlu1 }
  0xcc   : > { %v208_v47 = vpop.trf.xlu0  ;;  %264 = vst [vmem:[%s775_s21 + $0x78] sm:$0xff] %v240_v46 }
  0xcd   : > { %263 = vst [vmem:[%s775_s21 + $0x70] sm:$0xff] %v208_v47 }
  0xcf   : > { %v241_v48 = vpop.trf.xlu1 }
  0xd0   : > { %v209_v49 = vpop.trf.xlu0  ;;  %266 = vst [vmem:[%s775_s21 + $0x88] sm:$0xff] %v241_v48 }
  0xd1   : > { %265 = vst [vmem:[%s775_s21 + $0x80] sm:$0xff] %v209_v49 }
  0xd3   : > { %v242_v50 = vpop.trf.xlu1 }
  0xd4   : > { %v210_v51 = vpop.trf.xlu0  ;;  %268 = vst [vmem:[%s775_s21 + $0x98] sm:$0xff] %v242_v50 }
  0xd5   : > { %267 = vst [vmem:[%s775_s21 + $0x90] sm:$0xff] %v210_v51 }
  0xd7   : > { %v243_v52 = vpop.trf.xlu1 }
  0xd8   : > { %v211_v53 = vpop.trf.xlu0  ;;  %270 = vst [vmem:[%s775_s21 + $0xa8] sm:$0xff] %v243_v52 }
  0xd9   : > { %269 = vst [vmem:[%s775_s21 + $0xa0] sm:$0xff] %v211_v53 }
  0xdb   : > { %v244_v54 = vpop.trf.xlu1 }
  0xdc   : > { %v212_v55 = vpop.trf.xlu0  ;;  %272 = vst [vmem:[%s775_s21 + $0xb8] sm:$0xff] %v244_v54 }
  0xdd   : > { %271 = vst [vmem:[%s775_s21 + $0xb0] sm:$0xff] %v212_v55 }
  0xdf   : > { %v245_v56 = vpop.trf.xlu1 }
  0xe0   : > { %v213_v57 = vpop.trf.xlu0  ;;  %274 = vst [vmem:[%s775_s21 + $0xc8] sm:$0xff] %v245_v56 }
  0xe1   : > { %273 = vst [vmem:[%s775_s21 + $0xc0] sm:$0xff] %v213_v57 }
  0xe3   : > { %v246_v58 = vpop.trf.xlu1 }
  0xe4   : > { %v214_v59 = vpop.trf.xlu0  ;;  %276 = vst [vmem:[%s775_s21 + $0xd8] sm:$0xff] %v246_v58 }
  0xe5   : > { %275 = vst [vmem:[%s775_s21 + $0xd0] sm:$0xff] %v214_v59 }
  0xe7   : > { %v247_v60 = vpop.trf.xlu1 }
  0xe8   : > { %v215_v61 = vpop.trf.xlu0  ;;  %278 = vst [vmem:[%s775_s21 + $0xe8] sm:$0xff] %v247_v60 }
  0xe9   : > { %277 = vst [vmem:[%s775_s21 + $0xe0] sm:$0xff] %v215_v61 }
  0xeb   : > { %v248_v62 = vpop.trf.xlu1 }
  0xec   : > { %v216_v63 = vpop.trf.xlu0  ;;  %280 = vst [vmem:[%s775_s21 + $0xf8] sm:$0xff] %v248_v62 }
  0xed   : > { %279 = vst [vmem:[%s775_s21 + $0xf0] sm:$0xff] %v216_v63 }
  0xee   : > { %529 = shalt.err (!%p526_p7)
}
  0xef   : > { %s530_s4 = scalar_lea.hbm %s813_s9, 4096  ;;  %s534_s21 = scalar_lea.hbm %s871_s1, 16384 }
  0xf0   : > { %p531_p10 = scmp.ne.s32.totalorder %s813_s9, %s530_s4  ;;  %p535_p13 = scmp.lt.s32.totalorder %s813_s9, %s871_s1 }
  0xf1   : > { %p536_p1 = scmp.lt.s32.totalorder %s534_s21, %s530_s4 }
  0xf2   : > { %p532_p11 = pnand %p531_p10, %p696_p9 }
  0xf3   : > { %p537_p8 = por %p536_p1, %p535_p13 }
  0xf4   : > { %p533_p3 = pneg %p532_p11 }
  0xf6   : > { %p538_p0 = pnand %p537_p8, %p533_p3 }
  0xf8   : > { %541 = shalt.err (!%p538_p0)
}
  0xf9   : > { %s619_s19 = smov 256   ;;  %s620_s23 = smov 16  }
  0xfa   : > { %407 = dma.vmem_to_hbm [thread:$0]  (%p696_p9), %s815_s18, 4096, %s813_s9, %s282_s10, %s619_s19, %s619_s19, %s620_s23  }
  0xfb PF: > { %p418_p2 = scmp.ge.s32.totalorder %s612_s13, 2  ;;  %s313_s24 = sand.u32 1, %s584_s6  }
  0xfc   : > { %s314_s28 = scalar_lea.sflag [#allocation4], %s313_s24 }
  0xfd   : > { %p414_p4 = pnand %p418_p2, %p702_p12 }
  0xff   : > { %p415_p5 = pneg %p414_p4 }
 0x101   : > { %579 = dma.done.wait (%p415_p5), %s314_s28, 4096  }
 0x102   : > { %581 = vsyncadd (%p415_p5), %s314_s28, 4294963200  ;;  %s17_s13 = sadd.s32 1, %s612_s13   ;;  %s877_s6 = smov %s588_s7 }
 0x103   : > { %p14_p6 = scmp.ge.s32.totalorder %s17_s13, 6   ;;  %s878_s7 = smov %s592_s8 }
 0x104   : > { %s879_s8 = smov %s709_s27  ;;  %s880_s9 = smov %s604_s11 }
 0x105   : > { %s881_s10 = smov %s608_s12  ;;  %s882_s11 = smov %s885_s16 }
 0x106   : > { %s883_s12 = smov %s889_s17  ;;  %16 = sbr.rel (!%p14_p6) target bundleno = 7 (0x7), region = 69 }
 0x10b   :  { %319 = vsyncpa [#allocation3], 1 }
 0x10c   :  { %321 = vsyncpa [#allocation3 + $0x1], 1 }
 0x10d   :  { %322 = vsyncpa [#allocation4], 1 }
 0x10e   :  { %324 = vsyncpa [#allocation4 + $0x1], 1 }

</bundles_post_ra>
